<compile_context>
chip_gen: v5e
topology: v5e:2x2
jax: 0.10.0
libtpu: 0.0.40
codegen_flags: <defaults>
</compile_context>

<pallas_src>
import jax
import jax.numpy as jnp
from jax import lax
from jax.experimental import pallas as pl
from jax.experimental.pallas import tpu as pltpu


def _round_up(a, b):
    return ((a + b - 1) // b) * b


def net_kernel(x_ref, w_ref, o_ref, acc_ref):
    """One (batch-tile, k-tile) step of sum_k relu(x @ W^T).

    x_ref : (tm, d)  activation tile
    w_ref : (tk, d)  weight tile, native PyTorch Linear layout
    o_ref : (1, tm)  lane-dense per-row sums for this batch tile
    acc_ref: (1, tm) f32 accumulator (persists across the k-tile axis)
    """
    j = pl.program_id(1)

    @pl.when(j == 0)
    def _init():
        acc_ref[...] = jnp.zeros_like(acc_ref)

    # h[f, b] = sum_d W[f, d] * x[b, d]  -> (tk, tm); contraction on d (MXU),
    # f32 accumulation.
    h = lax.dot_general(
        w_ref[...],
        x_ref[...],
        dimension_numbers=(((1,), (1,)), ((), ())),
        preferred_element_type=jnp.float32,
    )
    h = jnp.maximum(h, 0.0)                            # ReLU (VPU)
    # Partial reduction over this k tile -> (1, tm), lane-dense (XLU sublane reduce).
    acc_ref[...] += jnp.sum(h, axis=0, keepdims=True)

    @pl.when(j == pl.num_programs(1) - 1)
    def _finalize():
        o_ref[...] = acc_ref[...].astype(o_ref.dtype)  # single lane-dense store


def net_forward(x, weight, *, tm=None, tk=None):
    """x: (B, d) float32, weight: (k, d) float32 (PyTorch Linear layout).
    Returns (B,) float32 == torch.sum(relu(x @ weight.T), dim=1)."""
    B, d = x.shape
    k, d_w = weight.shape
    assert d == d_w, "weight must be (k, d) for x of shape (B, d)"

    # ---- batch tiling (batch rows go to the lane axis of the output) ----
    if tm is None:
        tm = 256
    if B <= tm:
        tm = B                      # single batch tile; block == full array dims
        b_pad = B
    else:
        tm = max(128, _round_up(tm, 128))   # lane rule for multi-tile lane-dense out
        b_pad = _round_up(B, tm)

    # ---- k tiling (sum-of-ReLU is separable across k tiles) ----
    if tk is None:
        tk = 512
    if k <= tk:
        tk = k                      # single k tile; block == full array dims
        k_pad = k
    else:
        tk = max(8, _round_up(tk, 8))
        k_pad = _round_up(k, tk)

    # Zero padding is exact: padded batch rows are sliced off, padded weight
    # rows give relu(0) = 0 which contributes nothing to the sum.
    x_p = x if b_pad == B else jnp.pad(x, ((0, b_pad - B), (0, 0)))
    w_p = weight if k_pad == k else jnp.pad(weight, ((0, k_pad - k), (0, 0)))

    num_m = b_pad // tm
    num_k = k_pad // tk

    itemsize = jnp.dtype(x.dtype).itemsize
    cost = pl.CostEstimate(
        flops=2 * b_pad * d * k_pad + 2 * b_pad * k_pad,
        transcendentals=0,
        bytes_accessed=(b_pad * d + k_pad * d) * itemsize + b_pad * 4,
    )

    out = pl.pallas_call(
        net_kernel,
        out_shape=jax.ShapeDtypeStruct((1, b_pad), jnp.float32),
        grid_spec=pltpu.PrefetchScalarGridSpec(
            num_scalar_prefetch=0,
            grid=(num_m, num_k),                                  # reduction axis last
            in_specs=[
                pl.BlockSpec((tm, d), lambda i, j: (i, 0)),       # x tile
                pl.BlockSpec((tk, d), lambda i, j: (j, 0)),       # native (k, d) weight tile
            ],
            out_specs=pl.BlockSpec((1, tm), lambda i, j: (0, i)), # lane-dense output
            scratch_shapes=[pltpu.VMEM((1, tm), jnp.float32)],
        ),
        compiler_params=pltpu.CompilerParams(
            dimension_semantics=("parallel", "arbitrary"),
            vmem_limit_bytes=64 * 1024 * 1024,
        ),
        cost_estimate=cost,
    )(x_p, w_p)

    return out[0, :B]


if __name__ == "__main__":
    key = jax.random.PRNGKey(0)
    kx, kw, kx2, kw2 = jax.random.split(key, 4)

    # Small shapes consistent with Net(d, k): x is (batch, d), weight is (k, d).
    batch, d, k = 8, 32, 16
    x = jax.random.normal(kx, (batch, d), dtype=jnp.float32)
    weight = jax.random.normal(kw, (k, d), dtype=jnp.float32) * 0.1

    y = net_forward(x, weight)
    jax.block_until_ready(y)

    h_ref = lax.dot_general(
        x, weight, (((1,), (1,)), ((), ())), precision=lax.Precision.HIGHEST
    )
    y_ref = jnp.sum(jnp.maximum(h_ref, 0.0), axis=1)
    assert y.shape == (batch,)
    assert jnp.allclose(y, y_ref, atol=1e-5, rtol=1e-5)

    # Larger, non-divisible shapes to exercise the tiled + padded grid path.
    batch2, d2, k2 = 200, 256, 100
    x2 = jax.random.normal(kx2, (batch2, d2), dtype=jnp.float32)
    weight2 = jax.random.normal(kw2, (k2, d2), dtype=jnp.float32) * 0.05
    y2 = net_forward(x2, weight2, tm=128, tk=64)
    jax.block_until_ready(y2)

    h2_ref = lax.dot_general(
        x2, weight2, (((1,), (1,)), ((), ())), precision=lax.Precision.HIGHEST
    )
    y2_ref = jnp.sum(jnp.maximum(h2_ref, 0.0), axis=1)
    assert y2.shape == (batch2,)
    assert jnp.allclose(y2, y2_ref, atol=2e-3, rtol=2e-3)

    print("KERNEL_OK")
</pallas_src>

<mosaic_0001>
module attributes {stable_mosaic.version = 11 : i64} {
  func.func @net_kernel(%arg0: i32, %arg1: i32, %arg2: memref<8x32xf32, #tpu.memory_space<vmem>>, %arg3: memref<16x32xf32, #tpu.memory_space<vmem>>, %arg4: memref<1x8xf32, #tpu.memory_space<vmem>>, %arg5: memref<1x8xf32, #tpu.memory_space<vmem>>) attributes {dimension_semantics = [#tpu.dimension_semantics<parallel>, #tpu.dimension_semantics<arbitrary>], iteration_bounds = array<i64: 1, 1>, scalar_prefetch = 0 : i64, scratch_operands = 1 : i64, tpu.core_type = #tpu.core_type<tc>, window_params = [{transform_indices = @transform_0, window_bounds = array<i64: 8, 32>}, {transform_indices = @transform_1, window_bounds = array<i64: 16, 32>}, {transform_indices = @transform_2, window_bounds = array<i64: 1, 8>}]} {
    %c0_i32 = arith.constant 0 : i32
    %0 = arith.cmpi eq, %arg1, %c0_i32 : i32
    %1 = arith.extui %0 : i1 to i32
    %c0_i32_0 = arith.constant 0 : i32
    %2 = arith.cmpi ne, %1, %c0_i32_0 : i32
    scf.if %2 {
      %cst_12 = arith.constant 0.000000e+00 : f32
      %16 = vector.broadcast %cst_12 : f32 to vector<1x8xf32>
      %c0_13 = arith.constant 0 : index
      %c0_14 = arith.constant 0 : index
      %17 = vector.load %arg5[%c0_13, %c0_14] : memref<1x8xf32, #tpu.memory_space<vmem>>, vector<1x8xf32>
      tpu.vector_store %arg5[%c0_13, %c0_14], %16 {strides = array<i32>} : memref<1x8xf32, #tpu.memory_space<vmem>>, vector<1x8xf32>,
    } else {
    }
    %c0 = arith.constant 0 : index
    %c0_1 = arith.constant 0 : index
    %3 = vector.load %arg3[%c0, %c0_1] : memref<16x32xf32, #tpu.memory_space<vmem>>, vector<16x32xf32>
    %c0_2 = arith.constant 0 : index
    %c0_3 = arith.constant 0 : index
    %4 = vector.load %arg2[%c0_2, %c0_3] : memref<8x32xf32, #tpu.memory_space<vmem>>, vector<8x32xf32>
    %cst = arith.constant dense<0.000000e+00> : vector<16x8xf32>
    %5 = tpu.matmul %3, %4, %cst {dimension_numbers = #tpu.dot_dimension_numbers<[1], [1], [0], [0], [0, 0, 1, 0], [], []>} : vector<16x32xf32>, vector<8x32xf32>, vector<16x8xf32> -> vector<16x8xf32>
    %cst_4 = arith.constant 0.000000e+00 : f32
    %6 = vector.broadcast %cst_4 : f32 to vector<16x8xf32>
    %7 = arith.maximumf %5, %6 : vector<16x8xf32>
    %c0_5 = arith.constant 0 : index
    %c0_6 = arith.constant 0 : index
    %8 = vector.load %arg5[%c0_5, %c0_6] : memref<1x8xf32, #tpu.memory_space<vmem>>, vector<1x8xf32>
    %cst_7 = arith.constant dense<0.000000e+00> : vector<8xf32>
    %9 = vector.multi_reduction <add>, %7, %cst_7 [0] : vector<16x8xf32> to vector<8xf32>
    %10 = vector.shape_cast %9 : vector<8xf32> to vector<1x8xf32>
    %11 = arith.addf %8, %10 : vector<1x8xf32>
    %c0_8 = arith.constant 0 : index
    %c0_9 = arith.constant 0 : index
    %12 = vector.load %arg5[%c0_8, %c0_9] : memref<1x8xf32, #tpu.memory_space<vmem>>, vector<1x8xf32>
    tpu.vector_store %arg5[%c0_8, %c0_9], %11 {strides = array<i32>} : memref<1x8xf32, #tpu.memory_space<vmem>>, vector<1x8xf32>,
    %c0_i32_10 = arith.constant 0 : i32
    %13 = arith.cmpi eq, %arg1, %c0_i32_10 : i32
    %14 = arith.extui %13 : i1 to i32
    %c0_i32_11 = arith.constant 0 : i32
    %15 = arith.cmpi ne, %14, %c0_i32_11 : i32
    scf.if %15 {
      %c0_12 = arith.constant 0 : index
      %c0_13 = arith.constant 0 : index
      %16 = vector.load %arg5[%c0_12, %c0_13] : memref<1x8xf32, #tpu.memory_space<vmem>>, vector<1x8xf32>
      %c0_14 = arith.constant 0 : index
      %c0_15 = arith.constant 0 : index
      %17 = vector.load %arg4[%c0_14, %c0_15] : memref<1x8xf32, #tpu.memory_space<vmem>>, vector<1x8xf32>
      tpu.vector_store %arg4[%c0_14, %c0_15], %16 {strides = array<i32>} : memref<1x8xf32, #tpu.memory_space<vmem>>, vector<1x8xf32>,
    } else {
    }
    return
  }
  func.func @transform_0(%arg0: i32, %arg1: i32) -> (i32, i32) {
    %c0_i32 = arith.constant 0 : i32
    %c0_i32_0 = arith.constant 0 : i32
    return %arg0, %c0_i32 : i32, i32
  }
  func.func @transform_1(%arg0: i32, %arg1: i32) -> (i32, i32) {
    %c0_i32 = arith.constant 0 : i32
    %c0_i32_0 = arith.constant 0 : i32
    return %arg1, %c0_i32 : i32, i32
  }
  func.func @transform_2(%arg0: i32, %arg1: i32) -> (i32, i32) {
    %c0_i32 = arith.constant 0 : i32
    %c0_i32_0 = arith.constant 0 : i32
    return %c0_i32, %arg0 : i32, i32
  }
}

</mosaic_0001>

<bundles_post_ra>
// kernel: tpu_custom_call.1
= control target key start
LH: loop header
LB: loop body
LE: loop exit
PB: predicated region body
PF: predicated region fallthrough
CT: control target
= control target key end

     0   :  { %7 = vsyncpa [#allocation4], 0  ;;  %s244_s0 = inlined_call_operand.hbm [shape: f32[8,32], index: 0, kind: input, shape index: {}]   ;;  %s245_s1 = inlined_call_operand.hbm [shape: f32[16,32], index: 1, kind: input, shape index: {}]   ;;  %s246_s2 = inlined_call_operand.hbm [shape: f32[1,8], index: 2, kind: output, shape index: {}]  }
   0x1   :  { %8 = vsyncpa [#allocation7], 0 }
   0x2   :  { %9 = vsyncpa [#allocation5], 0  ;;  %s15_s11 = sshll.u32 %s244_s0, 4  ;;  %s211_s12 = smov [#allocation3]   ;;  %s16_s11 = int_to_ptr.hbm [resolvable:$true] %s15_s11 }
   0x3   :  { %s17_s13 = sshll.u32 %s211_s12, 4  ;;  %s25_s16 = sshll.u32 %s245_s1, 4  ;;  %s18_s13 = int_to_ptr.vmem [resolvable:$true] %s17_s13  ;;  %s26_s16 = int_to_ptr.hbm [resolvable:$true] %s25_s16 }
   0x4   :  { %20 = dma.hbm_to_vmem [thread:$0]  %s16_s11, 128, %s18_s13, [#allocation4]  }
   0x5   :  { %s212_s17 = smov [#allocation6]   ;;  %s213_s19 = smov 128  }
   0x6   :  { %s27_s18 = sshll.u32 %s212_s17, 4  ;;  %s214_s20 = smov 8   ;;  %s28_s18 = int_to_ptr.vmem [resolvable:$true] %s27_s18 }
   0x7   :  { %33 = dma.hbm_to_vmem [thread:$0]  %s26_s16, 256, %s28_s18, [#allocation7], %s213_s19, %s213_s19, %s214_s20  }
   0x8   :  { %205 = dma.done.wait [#allocation4], 128  }
   0x9   :  { %206 = vsyncadd [#allocation4], 4294967168 }
   0xa   :  { %207 = dma.done.wait [#allocation7], 256  }
   0xb   :  { %208 = vsyncadd [#allocation7], 4294967040  ;;  %vm51_vm0 = vcmask 261120   ;;  %v50_v0 = vld [vmem:[#allocation3] sm:$0xff]  ;;  %v48_v1 = vld [vmem:[#allocation6] sm:$0xff]  ;;  %vm46_vm1 = vcmask 57344  }
   0xc   :  { %123 = vmatpush.xpose.msk.msra.mxu0 %vm51_vm0, %v50_v0  ;;  %126 = vmatpush.xpose.msk.msra.mxu1 %vm51_vm0, %v50_v0  ;;  %v49_v2 = vld [vmem:[#allocation6 + $0x8] sm:$0xff]  ;;  %v215_v3 = vmov 0.0   ;;  %vm87_vm2 = vcmask 64512   ;;  %s216_s0 = smov [#allocation8]   ;;  %s112_s23 = sshll.u32 %s246_s2, 4  ;;  %s113_s23 = int_to_ptr.hbm [resolvable:$true] %s112_s23 }
   0xd   :  { %47 = vst.msk [vmem:[#allocation2] sm:$0x1] %vm46_vm1, %v215_v3  ;;  %s110_s1 = sshll.u32 %s216_s0, 4  ;;  %s111_s1 = int_to_ptr.vmem [resolvable:$true] %s110_s1 }
   0xf   :  { %124 = vmatmul.msk.f32.vlgmr.msra.gmra.mxu0 %vm51_vm0, %v48_v1  ;;  %125 = vmatmul.msk.f32.vlgmr.msra.gmra.mxu1 %vm51_vm0, %v49_v2 }
  0x14   :  { %v86_v16 = vld [vmem:[#allocation2] sm:$0x1] }
  0x8c   :  { %v78_v4 = vpop.f32.mrf.mxu0  ;;  %v81_v5 = vpop.f32.mrf.mxu1 }
  0x8d   :  { %v84_v6 = vmax.f32 %v78_v4, 0.0  ;;  %v85_v7 = vmax.f32 %v81_v5, 0.0 }
  0x8f   :  { %v88_v8 = vsel %vm87_vm2, %v84_v6, 0.0  ;;  %v89_v9 = vsel %vm87_vm2, %v85_v7, 0.0 }
  0x90   :  { %v90_v10 = vadd.f32 %v89_v9, %v88_v8 }
  0x92   :  { %v91_v11 = vrot.slane %v90_v10, 4 }
  0x94   :  { %v92_v12 = vadd.f32 %v91_v11, %v90_v10 }
  0x96   :  { %v93_v13 = vrot.slane %v92_v12, 2 }
  0x98   :  { %v94_v14 = vadd.f32 %v93_v13, %v92_v12 }
  0x9a   :  { %v95_v15 = vrot.slane %v94_v14, 1 }
  0x9c   :  { %v96_v17 = vadd.f32 %v95_v15, %v94_v14 }
  0x9e   :  { %v97_v18 = vadd.f32 %v96_v17, %v86_v16 }
  0xa0   :  { %99 = vst.msk [vmem:[#allocation2] sm:$0x1] %vm46_vm1, %v97_v18 }
  0xa7   :  { %v103_v19 = vld [vmem:[#allocation2] sm:$0x1] }
  0xa8   :  { %104 = vst.msk [vmem:[#allocation8] sm:$0x1] %vm46_vm1, %v103_v19 }
  0xa9   :  { %115 = dma.vmem_to_hbm [thread:$0]  %s111_s1, 16, %s113_s23, [#allocation5]  }
  0xaa   :  { %209 = dma.done.wait [#allocation5], 16  }
  0xab   :  { %210 = vsyncadd [#allocation5], 4294967280 }
  0xac   :  { %120 = vsyncpa [#allocation4], 1 }
  0xad   :  { %121 = vsyncpa [#allocation7], 1 }
  0xae   :  { %122 = vsyncpa [#allocation5], 1 }

</bundles_post_ra>
